<compile_context>
chip_gen: v6e
topology: v6e:2x2x1
jax: 0.10.0
libtpu: 0.0.40
codegen_flags: <defaults>
</compile_context>

<pallas_src>
import functools

import jax
import jax.numpy as jnp
from jax.experimental import pallas as pl
from jax.experimental.pallas import tpu as pltpu


def _dice_partial_kernel(logits_ref, target_ref, out_ref, *,
                         num_classes, pb_total, sub_tile, needs_row_mask):
    """Partial dice sums for one (batch, pixel-tile) grid cell."""
    t = target_ref[0, 0]                                   # (sub_tile, 128) int32

    # Class-axis max, unrolled over C: dense (sub_tile, 128) VPU ops only.
    m = logits_ref[0, 0].astype(jnp.float32)
    for c in range(1, num_classes):
        m = jnp.maximum(m, logits_ref[0, c].astype(jnp.float32))

    # exp-sum and label-selected exp (softmax numerator picked by the label);
    # the softmax probability tensor is never materialized.
    e_sum = jnp.zeros_like(m)
    inter = jnp.zeros_like(m)
    for c in range(num_classes):
        e_c = jnp.exp(logits_ref[0, c].astype(jnp.float32) - m)
        e_sum = e_sum + e_c
        inter = inter + jnp.where(t == c, e_c, 0.0)

    # EUP approximate reciprocal + one Newton step keeps |rel err| well below
    # the 1e-5 scale while avoiding a true divide pass.
    inv = pl.reciprocal(e_sum, approx=True)
    inv = inv * (2.0 - e_sum * inv)
    inter = inter * inv

    # one-hot row exists iff the label is a valid class (== sum over C of one-hot).
    valid = jnp.logical_and(t >= 0, t < num_classes)

    if needs_row_mask:
        # Only the last pixel tile can be ragged along the row axis; stale rows
        # may hold garbage (even NaNs), so select them out after the math.
        rows_left = pb_total - pl.program_id(1) * sub_tile
        row_ok = jax.lax.broadcasted_iota(jnp.int32, (sub_tile, 128), 0) < rows_left
        inter = jnp.where(row_ok, inter, 0.0)
        valid = jnp.logical_and(valid, row_ok)

    # Single lane-dense store: row 0 = intersection partial, row 1 = one-hot sum.
    out_ref[0] = jnp.concatenate(
        [jnp.sum(inter, axis=0, keepdims=True),
         jnp.sum(valid.astype(jnp.float32), axis=0, keepdims=True)], axis=0)


def _vmem_capacity_bytes():
    try:
        return int(pltpu.get_tpu_info().vmem_capacity_bytes)
    except Exception:
        return 64 * 1024 * 1024      # v7x per-core VMEM: the most constrained case


def _choose_tiling(pb_total, num_classes, logits_itemsize, batch, max_sub_tile):
    """Pick rows-of-128 per grid step + the scoped-VMEM limit to request."""
    phys = _vmem_capacity_bytes()
    # Scoped limit we request (v5e's default is 16 MiB of 128 MiB physical;
    # v7x has only 64 MiB physical, so stay well below it).
    vmem_limit = int(min(phys * 3 // 4, 96 * 1024 * 1024))
    budget = vmem_limit // 2
    # Working-set bytes per row of 128 pixels:
    #   logits block (native dtype, double-buffered) + target block (int32, x2)
    #   + ~6 live (rows, 128) f32 intermediates (cast/max/exp/exp-sum/inter/mask).
    per_row = (2 * num_classes * logits_itemsize + 2 * 4 + 6 * 4) * 128
    cap = budget // per_row
    # A few MiB of logits per grid step amortizes the ~0.35 us step overhead;
    # beyond ~8 MiB there is no benefit and grid-level parallelism shrinks.
    max_useful = (8 * 1024 * 1024) // max(1, num_classes * 128 * logits_itemsize)
    sub = max(8, min(cap, max_useful))
    if max_sub_tile is not None:
        sub = min(sub, max(1, int(max_sub_tile)))
    if batch == 1 and pb_total >= 16:
        sub = min(sub, pb_total // 2)    # keep >= 2 grid cells for v7x's 2 TCs
    if sub >= pb_total:
        sub = pb_total                   # full extent is always a legal block dim
    else:
        sub = max(8, (sub // 8) * 8)     # (8, 128) block-shape divisibility rule
        sub = min(sub, pb_total)
    return int(sub), vmem_limit


@functools.partial(jax.jit, static_argnames=("ignore_index", "max_sub_tile"))
def dice_loss(output, target, smooth=1.0, ignore_index=None, max_sub_tile=None):
    """JAX/Pallas equivalent of DiceLoss(smooth, ignore_index).forward(output, target)."""
    N, C, H, W = output.shape
    P = H * W

    target = target.astype(jnp.int32)
    if ignore_index is not None:
        # target[target == ignore_index] = target.min(), applied only when
        # ignore_index lies outside range(target.min(), target.max()) — exactly
        # the PyTorch module's condition.
        tmin = jnp.min(target)
        tmax = jnp.max(target)
        oob = jnp.logical_or(ignore_index < tmin, ignore_index >= tmax)
        target = jnp.where(jnp.logical_and(oob, target == ignore_index), tmin, target)

    pb_total = pl.cdiv(P, 128)           # rows of 128 pixels
    p_pad = pb_total * 128

    x3 = output.reshape(N, C, P)         # free reshape: native NCHW order & dtype
    t3 = target.reshape(N, 1, P)
    if p_pad != P:
        # Ragged pixel count: pad once so the (rows, 128) view is exact.
        # Padded pixels get logits 0 / label C -> contribute exactly zero to
        # both partial sums and cannot produce Inf/NaN.
        x3 = jnp.pad(x3, ((0, 0), (0, 0), (0, p_pad - P)))
        t3 = jnp.pad(t3, ((0, 0), (0, 0), (0, p_pad - P)), constant_values=C)
    x4 = x3.reshape(N, C, pb_total, 128)
    t4 = t3.reshape(N, 1, pb_total, 128)

    sub_tile, vmem_limit = _choose_tiling(
        pb_total, C, x4.dtype.itemsize, N, max_sub_tile)
    num_tiles = pl.cdiv(pb_total, sub_tile)
    needs_row_mask = (pb_total % sub_tile) != 0
    num_parts = N * num_tiles

    kernel = functools.partial(
        _dice_partial_kernel, num_classes=C, pb_total=pb_total,
        sub_tile=sub_tile, needs_row_mask=needs_row_mask)

    parts = pl.pallas_call(
        kernel,
        out_shape=jax.ShapeDtypeStruct((num_parts, 2, 128), jnp.float32),
        grid_spec=pltpu.PrefetchScalarGridSpec(
            num_scalar_prefetch=0,
            grid=(N, num_tiles),
            in_specs=[
                pl.BlockSpec((1, C, sub_tile, 128), lambda n, j: (n, 0, j, 0)),
                pl.BlockSpec((1, 1, sub_tile, 128), lambda n, j: (n, 0, j, 0)),
            ],
            out_specs=pl.BlockSpec((1, 2, 128),
                                   lambda n, j: (n * num_tiles + j, 0, 0)),
        ),
        compiler_params=pltpu.CompilerParams(
            dimension_semantics=("parallel", "parallel"),
            vmem_limit_bytes=vmem_limit),
    )(x4, t4)

    intersection = jnp.sum(parts[:, 0, :])
    target_sum = jnp.sum(parts[:, 1, :])
    # softmax sums to 1 per pixel, so PyTorch's output_flat.sum() == N*H*W up to
    # float rounding (well below test tolerance); computed analytically here.
    output_sum = jnp.float32(N * P)
    return 1.0 - (2.0 * intersection + smooth) / (output_sum + target_sum + smooth)


def _reference_dice_loss(output, target, smooth=1.0, ignore_index=None):
    """Pure-JAX reference mirroring the PyTorch DiceLoss.forward."""
    target = target.astype(jnp.int32)
    if ignore_index is not None:
        tmin = jnp.min(target)
        tmax = jnp.max(target)
        oob = jnp.logical_or(ignore_index < tmin, ignore_index >= tmax)
        target = jnp.where(jnp.logical_and(oob, target == ignore_index), tmin, target)
    C = output.shape[1]
    p = jax.nn.softmax(output.astype(jnp.float32), axis=1)
    onehot = jax.nn.one_hot(target, C, axis=1, dtype=jnp.float32)
    inter = jnp.sum(p * onehot)
    return 1.0 - (2.0 * inter + smooth) / (jnp.sum(p) + jnp.sum(onehot) + smooth)


if __name__ == "__main__":
    key = jax.random.PRNGKey(0)
    k1, k2, k3 = jax.random.split(key, 3)

    # 1) default DiceLoss(): smooth=1.0, ignore_index=None
    N, C, H, W = 2, 4, 16, 16
    logits = jax.random.normal(k1, (N, C, H, W), dtype=jnp.float32)
    target = jax.random.randint(k2, (N, H, W), 0, C, dtype=jnp.int32)
    loss = jax.block_until_ready(dice_loss(logits, target))
    ref = jax.block_until_ready(_reference_dice_loss(logits, target))
    assert jnp.allclose(loss, ref, rtol=1e-4, atol=1e-5), (loss, ref)

    # 2) ignore_index remap path (handled in the wrapper, same kernel)
    target_ig = jnp.where(jax.random.bernoulli(k3, 0.1, (N, H, W)), 255, target)
    loss_ig = jax.block_until_ready(dice_loss(logits, target_ig, ignore_index=255))
    ref_ig = jax.block_until_ready(
        _reference_dice_loss(logits, target_ig, ignore_index=255))
    assert jnp.allclose(loss_ig, ref_ig, rtol=1e-4, atol=1e-5), (loss_ig, ref_ig)

    # 3) ragged pixel count + multi-tile grid + ragged-row mask:
    #    P = 1600 -> padded to 13 rows of 128; sub_tile forced to 8 -> 2 tiles,
    #    the last with only 5 valid rows.
    H2, W2 = 40, 40
    logits2 = jax.random.normal(k1, (N, C, H2, W2), dtype=jnp.float32)
    target2 = jax.random.randint(k2, (N, H2, W2), 0, C, dtype=jnp.int32)
    loss2 = jax.block_until_ready(dice_loss(logits2, target2, max_sub_tile=8))
    ref2 = jax.block_until_ready(_reference_dice_loss(logits2, target2))
    assert jnp.allclose(loss2, ref2, rtol=1e-4, atol=1e-5), (loss2, ref2)

    # 4) bf16 logits stay bf16 in HBM (cast happens per-tile inside the kernel).
    logits_bf = logits.astype(jnp.bfloat16)
    loss_bf = jax.block_until_ready(dice_loss(logits_bf, target))
    ref_bf = jax.block_until_ready(_reference_dice_loss(logits_bf, target))
    assert jnp.allclose(loss_bf, ref_bf, rtol=1e-3, atol=1e-3), (loss_bf, ref_bf)

    print("KERNEL_OK")
</pallas_src>

<mosaic_0001>
module attributes {stable_mosaic.version = 11 : i64} {
  func.func @_dice_partial_kernel(%arg0: i32, %arg1: i32, %arg2: memref<1x4x2x128xf32, #tpu.memory_space<vmem>>, %arg3: memref<1x1x2x128xi32, #tpu.memory_space<vmem>>, %arg4: memref<1x2x128xf32, #tpu.memory_space<vmem>>) attributes {dimension_semantics = [#tpu.dimension_semantics<parallel>, #tpu.dimension_semantics<parallel>], iteration_bounds = array<i64: 2, 1>, scalar_prefetch = 0 : i64, scratch_operands = 0 : i64, tpu.core_type = #tpu.core_type<tc>, window_params = [{transform_indices = @transform_0, window_bounds = array<i64: 1, 4, 2, 128>}, {transform_indices = @transform_1, window_bounds = array<i64: 1, 1, 2, 128>}, {transform_indices = @transform_2, window_bounds = array<i64: 1, 2, 128>}]} {
    %c0 = arith.constant 0 : index
    %c0_0 = arith.constant 0 : index
    %c0_1 = arith.constant 0 : index
    %c0_2 = arith.constant 0 : index
    %0 = vector.load %arg3[%c0, %c0_0, %c0_1, %c0_2] : memref<1x1x2x128xi32, #tpu.memory_space<vmem>>, vector<1x1x2x128xi32>
    %1 = vector.shape_cast %0 : vector<1x1x2x128xi32> to vector<2x128xi32>
    %c0_3 = arith.constant 0 : index
    %c0_4 = arith.constant 0 : index
    %c0_5 = arith.constant 0 : index
    %c0_6 = arith.constant 0 : index
    %2 = vector.load %arg2[%c0_3, %c0_4, %c0_5, %c0_6] : memref<1x4x2x128xf32, #tpu.memory_space<vmem>>, vector<1x1x2x128xf32>
    %3 = vector.shape_cast %2 : vector<1x1x2x128xf32> to vector<2x128xf32>
    %c0_7 = arith.constant 0 : index
    %c1 = arith.constant 1 : index
    %c0_8 = arith.constant 0 : index
    %c0_9 = arith.constant 0 : index
    %4 = vector.load %arg2[%c0_7, %c1, %c0_8, %c0_9] : memref<1x4x2x128xf32, #tpu.memory_space<vmem>>, vector<1x1x2x128xf32>
    %5 = vector.shape_cast %4 : vector<1x1x2x128xf32> to vector<2x128xf32>
    %6 = arith.maximumf %3, %5 : vector<2x128xf32>
    %c0_10 = arith.constant 0 : index
    %c2 = arith.constant 2 : index
    %c0_11 = arith.constant 0 : index
    %c0_12 = arith.constant 0 : index
    %7 = vector.load %arg2[%c0_10, %c2, %c0_11, %c0_12] : memref<1x4x2x128xf32, #tpu.memory_space<vmem>>, vector<1x1x2x128xf32>
    %8 = vector.shape_cast %7 : vector<1x1x2x128xf32> to vector<2x128xf32>
    %9 = arith.maximumf %6, %8 : vector<2x128xf32>
    %c0_13 = arith.constant 0 : index
    %c3 = arith.constant 3 : index
    %c0_14 = arith.constant 0 : index
    %c0_15 = arith.constant 0 : index
    %10 = vector.load %arg2[%c0_13, %c3, %c0_14, %c0_15] : memref<1x4x2x128xf32, #tpu.memory_space<vmem>>, vector<1x1x2x128xf32>
    %11 = vector.shape_cast %10 : vector<1x1x2x128xf32> to vector<2x128xf32>
    %12 = arith.maximumf %9, %11 : vector<2x128xf32>
    %cst = arith.constant 0.000000e+00 : f32
    %13 = vector.broadcast %cst : f32 to vector<2x128xf32>
    %cst_16 = arith.constant 0.000000e+00 : f32
    %14 = vector.broadcast %cst_16 : f32 to vector<2x128xf32>
    %c0_17 = arith.constant 0 : index
    %c0_18 = arith.constant 0 : index
    %c0_19 = arith.constant 0 : index
    %c0_20 = arith.constant 0 : index
    %15 = vector.load %arg2[%c0_17, %c0_18, %c0_19, %c0_20] : memref<1x4x2x128xf32, #tpu.memory_space<vmem>>, vector<1x1x2x128xf32>
    %16 = vector.shape_cast %15 : vector<1x1x2x128xf32> to vector<2x128xf32>
    %17 = arith.subf %16, %12 : vector<2x128xf32>
    %18 = math.exp %17 : vector<2x128xf32>
    %19 = arith.addf %13, %18 : vector<2x128xf32>
    %c0_i32 = arith.constant 0 : i32
    %20 = vector.broadcast %c0_i32 : i32 to vector<2x128xi32>
    %21 = arith.cmpi eq, %1, %20 : vector<2x128xi32>
    %cst_21 = arith.constant 0.000000e+00 : f32
    %22 = vector.broadcast %cst_21 : f32 to vector<2x128xf32>
    %23 = arith.select %21, %18, %22 : vector<2x128xi1>, vector<2x128xf32>
    %24 = arith.addf %14, %23 : vector<2x128xf32>
    %c0_22 = arith.constant 0 : index
    %c1_23 = arith.constant 1 : index
    %c0_24 = arith.constant 0 : index
    %c0_25 = arith.constant 0 : index
    %25 = vector.load %arg2[%c0_22, %c1_23, %c0_24, %c0_25] : memref<1x4x2x128xf32, #tpu.memory_space<vmem>>, vector<1x1x2x128xf32>
    %26 = vector.shape_cast %25 : vector<1x1x2x128xf32> to vector<2x128xf32>
    %27 = arith.subf %26, %12 : vector<2x128xf32>
    %28 = math.exp %27 : vector<2x128xf32>
    %29 = arith.addf %19, %28 : vector<2x128xf32>
    %c1_i32 = arith.constant 1 : i32
    %30 = vector.broadcast %c1_i32 : i32 to vector<2x128xi32>
    %31 = arith.cmpi eq, %1, %30 : vector<2x128xi32>
    %cst_26 = arith.constant 0.000000e+00 : f32
    %32 = vector.broadcast %cst_26 : f32 to vector<2x128xf32>
    %33 = arith.select %31, %28, %32 : vector<2x128xi1>, vector<2x128xf32>
    %34 = arith.addf %24, %33 : vector<2x128xf32>
    %c0_27 = arith.constant 0 : index
    %c2_28 = arith.constant 2 : index
    %c0_29 = arith.constant 0 : index
    %c0_30 = arith.constant 0 : index
    %35 = vector.load %arg2[%c0_27, %c2_28, %c0_29, %c0_30] : memref<1x4x2x128xf32, #tpu.memory_space<vmem>>, vector<1x1x2x128xf32>
    %36 = vector.shape_cast %35 : vector<1x1x2x128xf32> to vector<2x128xf32>
    %37 = arith.subf %36, %12 : vector<2x128xf32>
    %38 = math.exp %37 : vector<2x128xf32>
    %39 = arith.addf %29, %38 : vector<2x128xf32>
    %c2_i32 = arith.constant 2 : i32
    %40 = vector.broadcast %c2_i32 : i32 to vector<2x128xi32>
    %41 = arith.cmpi eq, %1, %40 : vector<2x128xi32>
    %cst_31 = arith.constant 0.000000e+00 : f32
    %42 = vector.broadcast %cst_31 : f32 to vector<2x128xf32>
    %43 = arith.select %41, %38, %42 : vector<2x128xi1>, vector<2x128xf32>
    %44 = arith.addf %34, %43 : vector<2x128xf32>
    %c0_32 = arith.constant 0 : index
    %c3_33 = arith.constant 3 : index
    %c0_34 = arith.constant 0 : index
    %c0_35 = arith.constant 0 : index
    %45 = vector.load %arg2[%c0_32, %c3_33, %c0_34, %c0_35] : memref<1x4x2x128xf32, #tpu.memory_space<vmem>>, vector<1x1x2x128xf32>
    %46 = vector.shape_cast %45 : vector<1x1x2x128xf32> to vector<2x128xf32>
    %47 = arith.subf %46, %12 : vector<2x128xf32>
    %48 = math.exp %47 : vector<2x128xf32>
    %49 = arith.addf %39, %48 : vector<2x128xf32>
    %c3_i32 = arith.constant 3 : i32
    %50 = vector.broadcast %c3_i32 : i32 to vector<2x128xi32>
    %51 = arith.cmpi eq, %1, %50 : vector<2x128xi32>
    %cst_36 = arith.constant 0.000000e+00 : f32
    %52 = vector.broadcast %cst_36 : f32 to vector<2x128xf32>
    %53 = arith.select %51, %48, %52 : vector<2x128xi1>, vector<2x128xf32>
    %54 = arith.addf %44, %53 : vector<2x128xf32>
    %55 = tpu.reciprocal %49 {approx = true} : vector<2x128xf32> -> vector<2x128xf32>
    %56 = arith.mulf %49, %55 : vector<2x128xf32>
    %cst_37 = arith.constant 2.000000e+00 : f32
    %57 = vector.broadcast %cst_37 : f32 to vector<2x128xf32>
    %58 = arith.subf %57, %56 : vector<2x128xf32>
    %59 = arith.mulf %55, %58 : vector<2x128xf32>
    %60 = arith.mulf %54, %59 : vector<2x128xf32>
    %c0_i32_38 = arith.constant 0 : i32
    %61 = vector.broadcast %c0_i32_38 : i32 to vector<2x128xi32>
    %62 = arith.cmpi sge, %1, %61 : vector<2x128xi32>
    %c4_i32 = arith.constant 4 : i32
    %63 = vector.broadcast %c4_i32 : i32 to vector<2x128xi32>
    %64 = arith.cmpi slt, %1, %63 : vector<2x128xi32>
    %65 = arith.andi %62, %64 : vector<2x128xi1>
    %cst_39 = arith.constant dense<0.000000e+00> : vector<128xf32>
    %66 = vector.multi_reduction <add>, %60, %cst_39 [0] : vector<2x128xf32> to vector<128xf32>
    %67 = vector.shape_cast %66 : vector<128xf32> to vector<1x128xf32>
    %68 = arith.extui %65 : vector<2x128xi1> to vector<2x128xi32>
    %69 = arith.sitofp %68 : vector<2x128xi32> to vector<2x128xf32>
    %cst_40 = arith.constant dense<0.000000e+00> : vector<128xf32>
    %70 = vector.multi_reduction <add>, %69, %cst_40 [0] : vector<2x128xf32> to vector<128xf32>
    %71 = vector.shape_cast %70 : vector<128xf32> to vector<1x128xf32>
    %72 = tpu.concatenate %67, %71 in 0 : vector<1x128xf32>, vector<1x128xf32> -> vector<2x128xf32>
    %c0_41 = arith.constant 0 : index
    %c0_42 = arith.constant 0 : index
    %c0_43 = arith.constant 0 : index
    %73 = vector.load %arg4[%c0_41, %c0_42, %c0_43] : memref<1x2x128xf32, #tpu.memory_space<vmem>>, vector<1x2x128xf32>
    %74 = vector.shape_cast %73 : vector<1x2x128xf32> to vector<2x128xf32>
    %75 = vector.shape_cast %72 : vector<2x128xf32> to vector<1x2x128xf32>
    tpu.vector_store %arg4[%c0_41, %c0_42, %c0_43], %75 {strides = array<i32>} : memref<1x2x128xf32, #tpu.memory_space<vmem>>, vector<1x2x128xf32>,
    return
  }
  func.func @transform_0(%arg0: i32, %arg1: i32) -> (i32, i32, i32, i32) {
    %c0_i32 = arith.constant 0 : i32
    %c0_i32_0 = arith.constant 0 : i32
    %c0_i32_1 = arith.constant 0 : i32
    return %arg0, %c0_i32, %arg1, %c0_i32_0 : i32, i32, i32, i32
  }
  func.func @transform_1(%arg0: i32, %arg1: i32) -> (i32, i32, i32, i32) {
    %c0_i32 = arith.constant 0 : i32
    %c0_i32_0 = arith.constant 0 : i32
    %c0_i32_1 = arith.constant 0 : i32
    return %arg0, %c0_i32, %arg1, %c0_i32_0 : i32, i32, i32, i32
  }
  func.func @transform_2(%arg0: i32, %arg1: i32) -> (i32, i32, i32) {
    %c1_i32 = arith.constant 1 : i32
    %0 = arith.muli %arg0, %c1_i32 : i32
    %1 = arith.addi %0, %arg1 : i32
    %c0_i32 = arith.constant 0 : i32
    %c0_i32_0 = arith.constant 0 : i32
    %c0_i32_1 = arith.constant 0 : i32
    return %1, %c0_i32, %c0_i32_0 : i32, i32, i32
  }
}

</mosaic_0001>

<bundles_post_ra>
// kernel: dice_loss.1
= control target key start
LH: loop header
LB: loop body
LE: loop exit
PB: predicated region body
PF: predicated region fallthrough
CT: control target
= control target key end

     0   :  { %s442_s9 = smov 0   ;;  %s444_s10 = smov 0   ;;  %s488_s0 = inlined_call_operand.vmem [shape: f32[2,4,2,128], index: 0, kind: input, shape index: {}]   ;;  %s489_s1 = inlined_call_operand.vmem [shape: s32[2,1,2,128], index: 1, kind: input, shape index: {}]   ;;  %s490_s2 = inlined_call_operand.vmem [shape: f32[2,2,128], index: 2, kind: output, shape index: {}]  }
   0x1   :  { %s446_s11 = smov 0  }
   0x2 LB: > { %s24_s12 = sadd.s32 1, %s420_s10  ;;  %p355_p0 = scmp.ge.s32.totalorder %s424_s11, 1  ;;  %s424_s11 = sphi %s446_s11, %s12_s11   ;;  %s420_s10 = sphi %s444_s10, %s492_s10   ;;  %s416_s9 = sphi %s442_s9, %s491_s9  }
   0x3   : > { %p26_p1 = scmp.ge.s32.totalorder %s24_s12, 2  ;;  %p145_p2 = scmp.lt.s32.totalorder %s424_s11, 3 }
   0x5   : > { %s494_s12 = smov (%p26_p1, %s24_s12), 0  ;;  %p146_p3 = pnand %p355_p0, %p145_p2 }
   0x6   : > { %p177_p4 = scmp.lt.s32.totalorder (!%p146_p3), %s416_s9, 1 }
   0x7   : > { %149 = sbr.rel (%p146_p3) target bundleno = 84 (0x54), region = 28 }
   0xc   : > { %s496_s9 = smov (!%p177_p4, %s416_s9), 1  ;;  %vm245_vm5 = vcmask 1041408   ;;  %v426_v25 = vmov 0.0   ;;  %vm262_vm8 = vcmask 1040384  }
   0xd   : > { %s366_s13 = sshll.u32 %s496_s9, 3  ;;  %s358_s17 = sshll.u32 %s496_s9, 1 }
   0xe   : > { %s184_s16 = scalar_lea.vmem %s488_s0, %s366_s13  ;;  %s191_s20 = scalar_lea.vmem %s489_s1, %s358_s17 }
   0xf   : > { %v199_v0 = vld [vmem:[%s184_s16] sm:$0x3]  ;;  %v360_v1 = vld [vmem:[%s184_s16 + $0x2] sm:$0x3]  ;;  %v361_v3 = vld [vmem:[%s184_s16 + $0x4] sm:$0x3]  ;;  %s196_s23 = scalar_lea.vmem %s490_s2, %s358_s17 }
  0x10   : > { %v202_v2 = vmax.f32 %v199_v0, %v360_v1  ;;  %v362_v4 = vld [vmem:[%s184_s16 + $0x6] sm:$0x3]  ;;  %v198_v21 = vld [vmem:[%s191_s20] sm:$0x3] }
  0x11   : > { %vm242_vm0 = vcmp.ge.s32.totalorder %v198_v21, 0  ;;  %vm243_vm1 = vcmp.lt.s32.totalorder %v198_v21, 4  ;;  %vm213_vm2 = vcmp.eq.s32.totalorder %v198_v21, 0  ;;  %vm220_vm3 = vcmp.eq.s32.totalorder %v198_v21, 1 }
  0x12   : > { %v205_v5 = vmax.f32 %v202_v2, %v361_v3  ;;  %vm244_vm4 = vmand %vm242_vm0, %vm243_vm1  ;;  %vm227_vm6 = vcmp.eq.s32.totalorder %v198_v21, 2  ;;  %vm234_vm7 = vcmp.eq.s32.totalorder %v198_v21, 3 }
  0x13   : > { %v363_v26 = vsel %vm244_vm4, 1.0, %v426_v25 }
  0x14   : > { %v208_v6 = vmax.f32 %v205_v5, %v362_v4  ;;  %v255_v28 = vsel %vm245_vm5, %v363_v26, 0.0 }
  0x15   : > { %v256_v30 = vrot.slane %v255_v28, 4 }
  0x16   : > { %v209_v7 = vsub.f32 %v199_v0, %v208_v6  ;;  %v216_v8 = vsub.f32 %v360_v1, %v208_v6  ;;  %v223_v9 = vsub.f32 %v361_v3, %v208_v6  ;;  %v230_v10 = vsub.f32 %v362_v4, %v208_v6 }
  0x17   : > { %v257_v35 = vadd.f32 %v256_v30, %v255_v28 }
  0x18   : > { %v210_v11 = vmul.f32 1.442695, %v209_v7  ;;  %v217_v12 = vmul.f32 1.442695, %v216_v8  ;;  %v224_v13 = vmul.f32 1.442695, %v223_v9 }
  0x19   : > { %v231_v14 = vmul.f32 1.442695, %v230_v10  ;;  %v258_v39 = vrot.slane %v257_v35, 2 }
  0x1a   : > { %392 = vpow2.f32 %v210_v11 }
  0x1b   : > { %394 = vpow2.f32 %v217_v12  ;;  %v259_v43 = vadd.f32 %v258_v39, %v257_v35 }
  0x1c   : > { %396 = vpow2.f32 %v224_v13 }
  0x1d   : > { %398 = vpow2.f32 %v231_v14  ;;  %v260_v46 = vrot.slane %v259_v43, 1 }
  0x1f   : > { %v261_v49 = vadd.f32 %v260_v46, %v259_v43 }
  0x27   : > { %v393_v15 = vpop.eup %392 }
  0x28   : > { %v395_v16 = vpop.eup %394  ;;  %v214_v23 = vsel %vm213_vm2, %v393_v15, 0.0 }
  0x29   : > { %v397_v17 = vpop.eup %396  ;;  %v219_v18 = vadd.f32 %v395_v16, %v393_v15  ;;  %v221_v24 = vsel %vm220_vm3, %v395_v16, 0.0 }
  0x2a   : > { %v399_v19 = vpop.eup %398  ;;  %v222_v27 = vadd.f32 %v221_v24, %v214_v23  ;;  %v228_v29 = vsel %vm227_vm6, %v397_v17, 0.0 }
  0x2b   : > { %v226_v20 = vadd.f32 %v397_v17, %v219_v18  ;;  %v235_v33 = vsel %vm234_vm7, %v399_v19, 0.0 }
  0x2c   : > { %v229_v31 = vadd.f32 %v228_v29, %v222_v27 }
  0x2d   : > { %v233_v22 = vadd.f32 %v399_v19, %v226_v20 }
  0x2e   : > { %v236_v36 = vadd.f32 %v235_v33, %v229_v31 }
  0x2f   : > { %400 = vrcp.f32 %v233_v22 }
  0x3c   : > { %v401_v32 = vpop.eup %400 }
  0x3d   : > { %v238_v34 = vmul.f32 %v401_v32, %v233_v22 }
  0x3f   : > { %v239_v37 = vsub.f32 2.0, %v238_v34 }
  0x41   : > { %v240_v38 = vmul.f32 %v401_v32, %v239_v37 }
  0x43   : > { %v241_v40 = vmul.f32 %v240_v38, %v236_v36 }
  0x45   : > { %v246_v41 = vsel %vm245_vm5, %v241_v40, 0.0 }
  0x46   : > { %v247_v42 = vrot.slane %v246_v41, 4 }
  0x48   : > { %v248_v44 = vadd.f32 %v247_v42, %v246_v41 }
  0x4a   : > { %v249_v45 = vrot.slane %v248_v44, 2 }
  0x4c   : > { %v250_v47 = vadd.f32 %v249_v45, %v248_v44 }
  0x4e   : > { %v251_v48 = vrot.slane %v250_v47, 1 }
  0x50   : > { %v252_v50 = vadd.f32 %v251_v48, %v250_v47 }
  0x52   : > { %v263_v51 = vsel %vm262_vm8, %v252_v50, %v261_v49 }
  0x53   : > { %264 = vst [vmem:[%s196_s23] sm:$0x3] %v263_v51 }
  0x54 PF: > { %s12_s11 = sadd.s32 1, %s424_s11   ;;  %s491_s9 = smov %s420_s10 }
  0x55   : > { %p9_p5 = scmp.ge.s32.totalorder %s12_s11, 4   ;;  %s492_s10 = smov %s494_s12 }
  0x57   :  { %11 = sbr.rel (!%p9_p5) target bundleno = 2 (0x2), region = 64 }

</bundles_post_ra>
